<compile_context>
chip_gen: v7x
topology: tpu7x:2x2x1
jax: 0.10.0
libtpu: 0.0.40
codegen_flags: <defaults>
</compile_context>

<pallas_src>
import functools

import jax
import jax.numpy as jnp
from jax.experimental import pallas as pl
from jax.experimental.pallas import tpu as pltpu

# Hyperparameters (the `hp` object from the PyTorch snippet).
HIDDEN = 32
LOGSTD_MIN = -20.0
LOGSTD_MAX = 2.0

LANE = 128      # TPU lane width
SUBLANE = 8     # sublane granularity for the batch dim


def _round_up(n, m):
    return ((n + m - 1) // m) * m


# --------------------------------------------------------------------------
# Kernel
# --------------------------------------------------------------------------
def actor_kernel(x_ref, w1_ref, b1_ref, w2_ref, b2_ref, wh_ref, bh_ref,
                 out_ref, *, logstd_min, logstd_max, half):
    """Fused Actor forward on one batch tile.

    x_ref  : (TM, num_inputs)        activations, unpadded, f32
    w1_ref : (num_inputs, HID_PAD)   fc1 weight (compute dtype)
    w2_ref : (HID_PAD, HID_PAD)      fc2 weight
    wh_ref : (HID_PAD, 2*half)       fused head: mean lanes [0:no], logstd lanes [half:half+no]
    b*_ref : (1, *) float32 biases
    out_ref: (TM, 2*half) f32        packed [mu lanes | clipped-logstd lanes]
    """
    x = x_ref[...].astype(w1_ref.dtype)
    # fc1 + tanh (MXU matmul, f32 accumulation; elementwise math in f32)
    h1 = jnp.tanh(
        jnp.dot(x, w1_ref[...], preferred_element_type=jnp.float32)
        + b1_ref[...])
    # fc2 + tanh
    h2 = jnp.tanh(
        jnp.dot(h1.astype(w2_ref.dtype), w2_ref[...],
                preferred_element_type=jnp.float32)
        + b2_ref[...])
    # Fused heads: one MXU pass -> [mu | logstd] in a single 2*half-lane block.
    y = (jnp.dot(h2.astype(wh_ref.dtype), wh_ref[...],
                 preferred_element_type=jnp.float32)
         + bh_ref[...])
    # Clamp only the logstd half via a lane mask (no slice/concat temporaries).
    lane = jax.lax.broadcasted_iota(jnp.int32, y.shape, 1)
    y = jnp.where(lane >= half, jnp.clip(y, logstd_min, logstd_max), y)
    # Single lane-dense store.
    out_ref[...] = y.astype(out_ref.dtype)


# --------------------------------------------------------------------------
# Parameter init / packing
# --------------------------------------------------------------------------
def xavier_uniform(key, fan_in, fan_out):
    """Xavier/Glorot uniform init (gain=1), stored as [in, out]."""
    bound = jnp.sqrt(6.0 / (fan_in + fan_out))
    return jax.random.uniform(key, (fan_in, fan_out), jnp.float32,
                              minval=-bound, maxval=bound)


def init_actor_params(key, num_inputs, num_outputs, hidden=HIDDEN):
    """Logical (unpadded) parameters, matching the PyTorch module."""
    k1, k2, k3, k4 = jax.random.split(key, 4)
    return {
        "w1": xavier_uniform(k1, num_inputs, hidden),
        "b1": jnp.zeros((1, hidden), jnp.float32),
        "w2": xavier_uniform(k2, hidden, hidden),
        "b2": jnp.zeros((1, hidden), jnp.float32),
        "wm": xavier_uniform(k3, hidden, num_outputs),
        "bm": jnp.zeros((1, num_outputs), jnp.float32),
        "wl": xavier_uniform(k4, hidden, num_outputs),
        "bl": jnp.zeros((1, num_outputs), jnp.float32),
    }


def _pad2d(a, rows, cols, dtype):
    out = jnp.zeros((rows, cols), dtype)
    return out.at[:a.shape[0], :a.shape[1]].set(a.astype(dtype))


def pack_actor_params(params, *, compute_dtype=jnp.float32):
    """One-time lane-dense packing of the weights for the kernel.

    - w1 keeps its real num_inputs rows (x is passed unpadded).
    - The hidden dim is padded to a 128-lane multiple (inert: zero weights /
      zero bias -> tanh(0)=0).
    - Both heads are fused into ONE lane block: mean occupies lanes
      [0:num_outputs], logstd occupies lanes [half:half+num_outputs], where
      half = 64 when num_outputs <= 64 (single 128-lane output slab).
    - Biases stay float32 (added after the f32-accumulated matmul).
    - compute_dtype=jnp.bfloat16 halves weight DMA bytes and is valid on
      v5e / v6e / v7x alike (f32 accumulation, f32 tanh/clip).
    """
    num_inputs, hidden = params["w1"].shape
    num_outputs = params["wm"].shape[1]
    hid_pad = _round_up(hidden, LANE)
    half = LANE // 2 if num_outputs <= LANE // 2 else _round_up(num_outputs, LANE)
    head_width = 2 * half

    wh = jnp.zeros((hid_pad, head_width), compute_dtype)
    wh = wh.at[:hidden, :num_outputs].set(params["wm"].astype(compute_dtype))
    wh = wh.at[:hidden, half:half + num_outputs].set(
        params["wl"].astype(compute_dtype))

    bh = jnp.zeros((1, head_width), jnp.float32)
    bh = bh.at[:, :num_outputs].set(params["bm"])
    bh = bh.at[:, half:half + num_outputs].set(params["bl"])

    return {
        "w1": _pad2d(params["w1"], num_inputs, hid_pad, compute_dtype),
        "b1": _pad2d(params["b1"], 1, hid_pad, jnp.float32),
        "w2": _pad2d(params["w2"], hid_pad, hid_pad, compute_dtype),
        "b2": _pad2d(params["b2"], 1, hid_pad, jnp.float32),
        "wh": wh,
        "bh": bh,
        "num_inputs": num_inputs,
        "num_outputs": num_outputs,
        "half": half,
    }


# --------------------------------------------------------------------------
# Wrapper
# --------------------------------------------------------------------------
def actor_forward(x, packed, *, logstd_min=LOGSTD_MIN, logstd_max=LOGSTD_MAX,
                  block_batch=1024):
    """Fused Actor forward.

    x      : [B, num_inputs] float32 (passed to the kernel unpadded)
    packed : output of pack_actor_params
    returns (mu, std, logstd), each [B, num_outputs] float32
    """
    B = x.shape[0]
    num_inputs = packed["num_inputs"]
    num_outputs = packed["num_outputs"]
    half = packed["half"]
    head_width = 2 * half
    hid_pad = packed["w1"].shape[1]

    # Balanced batch tiles: big tiles amortize the ~0.35us per-step overhead,
    # avoid a mostly-padded tail tile, and keep >=2 grid steps when B allows so
    # both v7x TensorCores get work (harmless on single-TC v5e/v6e).
    max_steps = pl.cdiv(B, SUBLANE)
    n_steps = max(pl.cdiv(B, block_batch), min(2, max_steps))
    tm = _round_up(pl.cdiv(B, n_steps), SUBLANE)
    grid_steps = pl.cdiv(B, tm)
    b_pad = grid_steps * tm          # output rows (tail rows are sliced off)

    kernel = functools.partial(actor_kernel, logstd_min=logstd_min,
                               logstd_max=logstd_max, half=half)

    out = pl.pallas_call(
        kernel,
        out_shape=jax.ShapeDtypeStruct((b_pad, head_width), jnp.float32),
        grid=(grid_steps,),
        in_specs=[
            # batch-tiled activations, UNPADDED last dim (== full array dim)
            pl.BlockSpec((tm, num_inputs), lambda i: (i, 0)),
            # weights/biases: constant block index -> stay resident in VMEM
            pl.BlockSpec((num_inputs, hid_pad), lambda i: (0, 0)),
            pl.BlockSpec((1, hid_pad), lambda i: (0, 0)),
            pl.BlockSpec((hid_pad, hid_pad), lambda i: (0, 0)),
            pl.BlockSpec((1, hid_pad), lambda i: (0, 0)),
            pl.BlockSpec((hid_pad, head_width), lambda i: (0, 0)),
            pl.BlockSpec((1, head_width), lambda i: (0, 0)),
        ],
        out_specs=pl.BlockSpec((tm, head_width), lambda i: (i, 0)),
        compiler_params=pltpu.CompilerParams(
            dimension_semantics=("parallel",)),
    )(x, packed["w1"], packed["b1"], packed["w2"], packed["b2"],
      packed["wh"], packed["bh"])

    mu = out[:B, :num_outputs]
    logstd = out[:B, half:half + num_outputs]
    std = jnp.exp(logstd)            # only B x num_outputs real columns
    return mu, std, logstd


# --------------------------------------------------------------------------
# Pure-JAX reference
# --------------------------------------------------------------------------
def actor_ref(x, p, logstd_min=LOGSTD_MIN, logstd_max=LOGSTD_MAX):
    h1 = jnp.tanh(x @ p["w1"] + p["b1"])
    h2 = jnp.tanh(h1 @ p["w2"] + p["b2"])
    mu = h2 @ p["wm"] + p["bm"]
    logstd = jnp.clip(h2 @ p["wl"] + p["bl"], logstd_min, logstd_max)
    return mu, jnp.exp(logstd), logstd


if __name__ == "__main__":
    key = jax.random.PRNGKey(0)
    k_params, k_x = jax.random.split(key)

    batch = 8
    num_inputs = 16
    num_outputs = 8

    params = init_actor_params(k_params, num_inputs, num_outputs, HIDDEN)
    x = jax.random.normal(k_x, (batch, num_inputs), jnp.float32)
    mu_r, std_r, logstd_r = actor_ref(x, params)

    # ---- f32 path: exact check against the pure-JAX reference ----
    packed_f32 = pack_actor_params(params, compute_dtype=jnp.float32)
    mu, std, logstd = actor_forward(x, packed_f32)
    jax.block_until_ready((mu, std, logstd))

    assert mu.shape == (batch, num_outputs)
    assert std.shape == (batch, num_outputs)
    assert logstd.shape == (batch, num_outputs)
    assert jnp.allclose(mu, mu_r, atol=1e-5, rtol=1e-5)
    assert jnp.allclose(std, std_r, atol=1e-5, rtol=1e-5)
    assert jnp.allclose(logstd, logstd_r, atol=1e-5, rtol=1e-5)

    # ---- bf16 MXU path (valid on v5e/v6e/v7x): f32 accumulation, loose check ----
    packed_bf16 = pack_actor_params(params, compute_dtype=jnp.bfloat16)
    mu_b, std_b, logstd_b = actor_forward(x, packed_bf16)
    jax.block_until_ready((mu_b, std_b, logstd_b))
    assert jnp.allclose(mu_b, mu_r, atol=1e-1, rtol=1e-1)
    assert jnp.allclose(std_b, std_r, atol=1e-1, rtol=1e-1)
    assert jnp.allclose(logstd_b, logstd_r, atol=1e-1, rtol=1e-1)

    print("KERNEL_OK")
</pallas_src>

<mosaic_0001>
module attributes {stable_mosaic.version = 11 : i64} {
  func.func @actor_kernel(%arg0: i32, %arg1: memref<8x16xf32, #tpu.memory_space<vmem>>, %arg2: memref<16x128xf32, #tpu.memory_space<vmem>>, %arg3: memref<1x128xf32, #tpu.memory_space<vmem>>, %arg4: memref<128x128xf32, #tpu.memory_space<vmem>>, %arg5: memref<1x128xf32, #tpu.memory_space<vmem>>, %arg6: memref<128x128xf32, #tpu.memory_space<vmem>>, %arg7: memref<1x128xf32, #tpu.memory_space<vmem>>, %arg8: memref<8x128xf32, #tpu.memory_space<vmem>>) attributes {dimension_semantics = [#tpu.dimension_semantics<parallel>], iteration_bounds = array<i64: 1>, scalar_prefetch = 0 : i64, scratch_operands = 0 : i64, tpu.core_type = #tpu.core_type<tc>, window_params = [{transform_indices = @transform_0, window_bounds = array<i64: 8, 16>}, {pipeline_mode = #tpu.pipeline_mode<synchronous>, transform_indices = @transform_1, window_bounds = array<i64: 16, 128>}, {pipeline_mode = #tpu.pipeline_mode<synchronous>, transform_indices = @transform_2, window_bounds = array<i64: 1, 128>}, {pipeline_mode = #tpu.pipeline_mode<synchronous>, transform_indices = @transform_3, window_bounds = array<i64: 128, 128>}, {pipeline_mode = #tpu.pipeline_mode<synchronous>, transform_indices = @transform_4, window_bounds = array<i64: 1, 128>}, {pipeline_mode = #tpu.pipeline_mode<synchronous>, transform_indices = @transform_5, window_bounds = array<i64: 128, 128>}, {pipeline_mode = #tpu.pipeline_mode<synchronous>, transform_indices = @transform_6, window_bounds = array<i64: 1, 128>}, {transform_indices = @transform_7, window_bounds = array<i64: 8, 128>}]} {
    %c0 = arith.constant 0 : index
    %c0_0 = arith.constant 0 : index
    %0 = vector.load %arg1[%c0, %c0_0] : memref<8x16xf32, #tpu.memory_space<vmem>>, vector<8x16xf32>
    %c0_1 = arith.constant 0 : index
    %c0_2 = arith.constant 0 : index
    %1 = vector.load %arg2[%c0_1, %c0_2] : memref<16x128xf32, #tpu.memory_space<vmem>>, vector<16x128xf32>
    %cst = arith.constant dense<0.000000e+00> : vector<8x128xf32>
    %2 = tpu.matmul %0, %1, %cst {dimension_numbers = #tpu.dot_dimension_numbers<[1], [0], [0], [1], [0, 0, 1, 1], [], []>} : vector<8x16xf32>, vector<16x128xf32>, vector<8x128xf32> -> vector<8x128xf32>
    %c0_3 = arith.constant 0 : index
    %c0_4 = arith.constant 0 : index
    %3 = vector.load %arg3[%c0_3, %c0_4] : memref<1x128xf32, #tpu.memory_space<vmem>>, vector<1x128xf32>
    %4 = vector.broadcast %3 : vector<1x128xf32> to vector<8x128xf32>
    %5 = arith.addf %2, %4 : vector<8x128xf32>
    %6 = math.tanh %5 : vector<8x128xf32>
    %c0_5 = arith.constant 0 : index
    %c0_6 = arith.constant 0 : index
    %7 = vector.load %arg4[%c0_5, %c0_6] : memref<128x128xf32, #tpu.memory_space<vmem>>, vector<128x128xf32>
    %cst_7 = arith.constant dense<0.000000e+00> : vector<8x128xf32>
    %8 = tpu.matmul %6, %7, %cst_7 {dimension_numbers = #tpu.dot_dimension_numbers<[1], [0], [0], [1], [0, 0, 1, 1], [], []>} : vector<8x128xf32>, vector<128x128xf32>, vector<8x128xf32> -> vector<8x128xf32>
    %c0_8 = arith.constant 0 : index
    %c0_9 = arith.constant 0 : index
    %9 = vector.load %arg5[%c0_8, %c0_9] : memref<1x128xf32, #tpu.memory_space<vmem>>, vector<1x128xf32>
    %10 = vector.broadcast %9 : vector<1x128xf32> to vector<8x128xf32>
    %11 = arith.addf %8, %10 : vector<8x128xf32>
    %12 = math.tanh %11 : vector<8x128xf32>
    %c0_10 = arith.constant 0 : index
    %c0_11 = arith.constant 0 : index
    %13 = vector.load %arg6[%c0_10, %c0_11] : memref<128x128xf32, #tpu.memory_space<vmem>>, vector<128x128xf32>
    %cst_12 = arith.constant dense<0.000000e+00> : vector<8x128xf32>
    %14 = tpu.matmul %12, %13, %cst_12 {dimension_numbers = #tpu.dot_dimension_numbers<[1], [0], [0], [1], [0, 0, 1, 1], [], []>} : vector<8x128xf32>, vector<128x128xf32>, vector<8x128xf32> -> vector<8x128xf32>
    %c0_13 = arith.constant 0 : index
    %c0_14 = arith.constant 0 : index
    %15 = vector.load %arg7[%c0_13, %c0_14] : memref<1x128xf32, #tpu.memory_space<vmem>>, vector<1x128xf32>
    %16 = vector.broadcast %15 : vector<1x128xf32> to vector<8x128xf32>
    %17 = arith.addf %14, %16 : vector<8x128xf32>
    %18 = tpu.iota {dimensions = array<i32: 1>} : vector<8x128xi32>
    %c64_i32 = arith.constant 64 : i32
    %19 = vector.broadcast %c64_i32 : i32 to vector<8x128xi32>
    %20 = arith.cmpi sge, %18, %19 : vector<8x128xi32>
    %cst_15 = arith.constant -2.000000e+01 : f32
    %cst_16 = arith.constant 2.000000e+00 : f32
    %21 = vector.broadcast %cst_15 : f32 to vector<8x128xf32>
    %22 = arith.maximumf %21, %17 : vector<8x128xf32>
    %23 = vector.broadcast %cst_16 : f32 to vector<8x128xf32>
    %24 = arith.minimumf %23, %22 : vector<8x128xf32>
    %25 = arith.select %20, %24, %17 : vector<8x128xi1>, vector<8x128xf32>
    %c0_17 = arith.constant 0 : index
    %c0_18 = arith.constant 0 : index
    %26 = vector.load %arg8[%c0_17, %c0_18] : memref<8x128xf32, #tpu.memory_space<vmem>>, vector<8x128xf32>
    tpu.vector_store %arg8[%c0_17, %c0_18], %25 {strides = array<i32>} : memref<8x128xf32, #tpu.memory_space<vmem>>, vector<8x128xf32>,
    return
  }
  func.func @transform_0(%arg0: i32) -> (i32, i32) {
    %c0_i32 = arith.constant 0 : i32
    %c0_i32_0 = arith.constant 0 : i32
    return %arg0, %c0_i32 : i32, i32
  }
  func.func @transform_1(%arg0: i32) -> (i32, i32) {
    %c0_i32 = arith.constant 0 : i32
    %c0_i32_0 = arith.constant 0 : i32
    %c0_i32_1 = arith.constant 0 : i32
    return %c0_i32, %c0_i32_0 : i32, i32
  }
  func.func @transform_2(%arg0: i32) -> (i32, i32) {
    %c0_i32 = arith.constant 0 : i32
    %c0_i32_0 = arith.constant 0 : i32
    %c0_i32_1 = arith.constant 0 : i32
    return %c0_i32, %c0_i32_0 : i32, i32
  }
  func.func @transform_3(%arg0: i32) -> (i32, i32) {
    %c0_i32 = arith.constant 0 : i32
    %c0_i32_0 = arith.constant 0 : i32
    %c0_i32_1 = arith.constant 0 : i32
    return %c0_i32, %c0_i32_0 : i32, i32
  }
  func.func @transform_4(%arg0: i32) -> (i32, i32) {
    %c0_i32 = arith.constant 0 : i32
    %c0_i32_0 = arith.constant 0 : i32
    %c0_i32_1 = arith.constant 0 : i32
    return %c0_i32, %c0_i32_0 : i32, i32
  }
  func.func @transform_5(%arg0: i32) -> (i32, i32) {
    %c0_i32 = arith.constant 0 : i32
    %c0_i32_0 = arith.constant 0 : i32
    %c0_i32_1 = arith.constant 0 : i32
    return %c0_i32, %c0_i32_0 : i32, i32
  }
  func.func @transform_6(%arg0: i32) -> (i32, i32) {
    %c0_i32 = arith.constant 0 : i32
    %c0_i32_0 = arith.constant 0 : i32
    %c0_i32_1 = arith.constant 0 : i32
    return %c0_i32, %c0_i32_0 : i32, i32
  }
  func.func @transform_7(%arg0: i32) -> (i32, i32) {
    %c0_i32 = arith.constant 0 : i32
    %c0_i32_0 = arith.constant 0 : i32
    return %arg0, %c0_i32 : i32, i32
  }
}

</mosaic_0001>

<bundles_post_ra>
// kernel: tpu_custom_call.1
= control target key start
LH: loop header
LB: loop body
LE: loop exit
PB: predicated region body
PF: predicated region fallthrough
CT: control target
= control target key end

     0   :  { %12 = vsyncpa [#allocation3], 0  ;;  %s825_s0 = inlined_call_operand.hbm [shape: f32[8,16], index: 0, kind: input, shape index: {}]   ;;  %s826_s1 = inlined_call_operand.hbm [shape: f32[16,128], index: 1, kind: input, shape index: {}]   ;;  %s827_s2 = inlined_call_operand.vmem [shape: f32[1,128], index: 2, kind: input, shape index: {}]   ;;  %s828_s3 = inlined_call_operand.hbm [shape: f32[128,128], index: 3, kind: input, shape index: {}]   ;;  %s829_s4 = inlined_call_operand.vmem [shape: f32[1,128], index: 4, kind: input, shape index: {}]   ;;  %s830_s5 = inlined_call_operand.hbm [shape: f32[128,128], index: 5, kind: input, shape index: {}]   ;;  %s831_s6 = inlined_call_operand.vmem [shape: f32[1,128], index: 6, kind: input, shape index: {}]   ;;  %s832_s7 = inlined_call_operand.hbm [shape: f32[8,128], index: 7, kind: output, shape index: {}]  }
   0x1   :  { %13 = vsyncpa [#allocation6], 0 }
   0x2   :  { %14 = vsyncpa [#allocation9], 0 }
   0x3   :  { %15 = vsyncpa [#allocation4], 0  ;;  %s677_s24 = smov [#allocation5]   ;;  %s559_s28 = scalar_lea.hbm %s826_s1, 256 }
   0x4   :  { %s31_s25 = sshll.u32 %s677_s24, 4  ;;  %p560_p0 = scmp.ne.s32.totalorder %s826_s1, %s559_s28  ;;  %s32_s25 = int_to_ptr.vmem [resolvable:$true] %s31_s25 }
   0x5   :  { %p563_p1 = scmp.lt.u32.totalorder %s559_s28, %s826_s1 }
   0x7   :  { %p565_p2 = pnand %p563_p1, %p560_p0 }
   0x9   :  { %568 = shalt.err (!%p565_p2)
}
   0xa   :  { %s569_s10 = scalar_lea.vmem %s32_s25, 256  ;;  %p574_p4 = scmp.lt.s32.totalorder %s32_s25, %s32_s25 }
   0xb   :  { %p570_p3 = scmp.ne.s32.totalorder %s32_s25, %s569_s10  ;;  %p575_p5 = scmp.lt.s32.totalorder %s569_s10, %s569_s10 }
   0xd   :  { %p576_p6 = por %p575_p5, %p574_p4 }
   0xf   :  { %p577_p7 = pnand %p576_p6, %p570_p3 }
  0x11   :  { %580 = shalt.err (!%p577_p7)
}
  0x12   :  { %s678_s11 = smov 128   ;;  %s679_s12 = smov 8  }
  0x13   :  { %37 = dma.hbm_to_vmem [thread:$0]  %s826_s1, 256, %s32_s25, [#allocation6], %s678_s11, %s678_s11, %s679_s12  }
  0x14   :  { %s680_s15 = smov [#allocation2]   ;;  %s681_s17 = smov [#allocation7]  }
  0x15   :  { %s22_s16 = sshll.u32 %s680_s15, 4  ;;  %s45_s18 = sshll.u32 %s681_s17, 4  ;;  %s23_s16 = int_to_ptr.vmem [resolvable:$true] %s22_s16  ;;  %s46_s18 = int_to_ptr.vmem [resolvable:$true] %s45_s18 }
  0x16   :  { %s581_s21 = scalar_lea.hbm %s825_s0, 128 }
  0x17   :  { %p582_p8 = scmp.ne.s32.totalorder %s825_s0, %s581_s21  ;;  %p585_p9 = scmp.lt.u32.totalorder %s581_s21, %s825_s0 }
  0x19   :  { %p587_p10 = pnand %p585_p9, %p582_p8 }
  0x1b   :  { %590 = shalt.err (!%p587_p10)
}
  0x1c   :  { %s591_s1 = scalar_lea.vmem %s23_s16, 128  ;;  %p596_p12 = scmp.lt.s32.totalorder %s23_s16, %s23_s16 }
  0x1d   :  { %p592_p11 = scmp.ne.s32.totalorder %s23_s16, %s591_s1  ;;  %p597_p13 = scmp.lt.s32.totalorder %s591_s1, %s591_s1 }
  0x1f   :  { %p598_p0 = por %p597_p13, %p596_p12 }
  0x21   :  { %p599_p1 = pnand %p598_p0, %p592_p11 }
  0x23   :  { %602 = shalt.err (!%p599_p1)
}
  0x24   :  { %25 = dma.hbm_to_vmem [thread:$0]  %s825_s0, 128, %s23_s16, [#allocation3]  }
  0x25   :  { %s603_s30 = scalar_lea.hbm %s828_s3, 2048 }
  0x26   :  { %p604_p2 = scmp.ne.s32.totalorder %s828_s3, %s603_s30  ;;  %p607_p3 = scmp.lt.u32.totalorder %s603_s30, %s828_s3 }
  0x28   :  { %p609_p4 = pnand %p607_p3, %p604_p2 }
  0x2a   :  { %612 = shalt.err (!%p609_p4)
}
  0x2b   :  { %s613_s14 = scalar_lea.vmem %s46_s18, 2048  ;;  %p618_p6 = scmp.lt.s32.totalorder %s46_s18, %s46_s18 }
  0x2c   :  { %p614_p5 = scmp.ne.s32.totalorder %s46_s18, %s613_s14  ;;  %p619_p7 = scmp.lt.s32.totalorder %s613_s14, %s613_s14 }
  0x2e   :  { %p620_p8 = por %p619_p7, %p618_p6 }
  0x30   :  { %p621_p9 = pnand %p620_p8, %p614_p5 }
  0x32   :  { %624 = shalt.err (!%p621_p9)
}
  0x33   :  { %51 = dma.hbm_to_vmem [thread:$0]  %s828_s3, 2048, %s46_s18, [#allocation6], %s678_s11, %s678_s11, %s679_s12  }
  0x34   :  { %s682_s16 = smov [#allocation8]   ;;  %s625_s21 = scalar_lea.hbm %s830_s5, 2048 }
  0x35   :  { %s59_s17 = sshll.u32 %s682_s16, 4  ;;  %p626_p10 = scmp.ne.s32.totalorder %s830_s5, %s625_s21  ;;  %s60_s17 = int_to_ptr.vmem [resolvable:$true] %s59_s17 }
  0x36   :  { %p629_p11 = scmp.lt.u32.totalorder %s625_s21, %s830_s5 }
  0x38   :  { %p631_p12 = pnand %p629_p11, %p626_p10 }
  0x3a   :  { %634 = shalt.err (!%p631_p12)
}
  0x3b   :  { %s635_s1 = scalar_lea.vmem %s60_s17, 2048  ;;  %p640_p0 = scmp.lt.s32.totalorder %s60_s17, %s60_s17 }
  0x3c   :  { %p636_p13 = scmp.ne.s32.totalorder %s60_s17, %s635_s1  ;;  %p641_p1 = scmp.lt.s32.totalorder %s635_s1, %s635_s1 }
  0x3e   :  { %p642_p2 = por %p641_p1, %p640_p0 }
  0x40   :  { %p643_p3 = pnand %p642_p2, %p636_p13 }
  0x42   :  { %646 = shalt.err (!%p643_p3)
}
  0x43   :  { %65 = dma.hbm_to_vmem [thread:$0]  %s830_s5, 2048, %s60_s17, [#allocation9], %s678_s11, %s678_s11, %s679_s12  }
  0x44   :  { %669 = dma.done.wait [#allocation3], 128  }
  0x45   :  { %670 = vsyncadd [#allocation3], 4294967168 }
  0x46   :  { %671 = dma.done.wait [#allocation6], 2304  }
  0x47   :  { %672 = vsyncadd [#allocation6], 4294964992 }
  0x48   :  { %673 = dma.done.wait [#allocation9], 2048  }
  0x49   :  { %674 = vsyncadd [#allocation9], 4294965248  ;;  %v683_v0 = vmov 0.0|0.0   ;;  %vm684_vm0 = vmmov 0   ;;  %v685_v1 = vmov 0.0   ;;  %v81_v2 = vld [vmem:[#allocation5] sm:$0xff] }
  0x4a   :  { %494 = vmatprep.subr.bf16.mxu0 %v683_v0  ;;  %421 = vmatprep.mubr.msk.f32.mxu0 %vm684_vm0, %v685_v1  ;;  %v82_v3 = vld [vmem:[#allocation5 + $0x8] sm:$0xff]  ;;  %v165_v5 = vld [vmem:[#allocation7] sm:$0xff]  ;;  %v166_v6 = vld [vmem:[#allocation7 + $0x8] sm:$0xff]  ;;  %vm90_vm1 = vcmask 130048   ;;  %s686_s28 = smov [#allocation10]  }
  0x4b   :  { %497 = vmatprep.subr.bf16.mxu1 %v683_v0  ;;  %456 = vmatprep.mubr.msk.f32.mxu1 %vm684_vm0, %v685_v1  ;;  %v495_v4 = vpack.c.bf16 %v82_v3, %v81_v2  ;;  %v167_v7 = vld [vmem:[#allocation7 + $0x10] sm:$0xff]  ;;  %v498_v8 = vpack.c.bf16 %v166_v6, %v165_v5  ;;  %v168_v9 = vld [vmem:[#allocation7 + $0x18] sm:$0xff]  ;;  %v80_v10 = vld [vmem:[#allocation2] sm:$0xff]  ;;  %s365_s29 = sshll.u32 %s686_s28, 4  ;;  %s366_s29 = int_to_ptr.vmem [resolvable:$true] %s365_s29 }
  0x4c   :  { %v501_v11 = vpack.c.bf16 %v168_v9, %v167_v7  ;;  %v169_v12 = vld [vmem:[#allocation7 + $0x20] sm:$0xff]  ;;  %v170_v13 = vld [vmem:[#allocation7 + $0x28] sm:$0xff]  ;;  %v171_v15 = vld [vmem:[#allocation7 + $0x30] sm:$0xff]  ;;  %p652_p5 = scmp.lt.s32.totalorder %s366_s29, %s366_s29 }
  0x4d   :  { %496 = vmatpush3.bf16.msra.mxu0 %v495_v4  ;;  %499 = vmatpush3.bf16.msra.mxu1 %v498_v8  ;;  %v504_v14 = vpack.c.bf16 %v170_v13, %v169_v12  ;;  %v172_v16 = vld [vmem:[#allocation7 + $0x38] sm:$0xff]  ;;  %v173_v18 = vld [vmem:[#allocation7 + $0x40] sm:$0xff]  ;;  %v174_v19 = vld [vmem:[#allocation7 + $0x48] sm:$0xff] }
  0x4e   :  { %521 = vmatprep.subr.bf16.mxu0 %v683_v0  ;;  %500 = vmatprep.subr.bf16.mxu1 %v683_v0  ;;  %v507_v17 = vpack.c.bf16 %v172_v16, %v171_v15  ;;  %v510_v20 = vpack.c.bf16 %v174_v19, %v173_v18  ;;  %v175_v21 = vld [vmem:[#allocation7 + $0x50] sm:$0xff]  ;;  %v176_v22 = vld [vmem:[#allocation7 + $0x58] sm:$0xff]  ;;  %v177_v24 = vld [vmem:[#allocation7 + $0x60] sm:$0xff] }
  0x4f   :  { %v513_v23 = vpack.c.bf16 %v176_v22, %v175_v21  ;;  %v178_v25 = vld [vmem:[#allocation7 + $0x68] sm:$0xff]  ;;  %v179_v27 = vld [vmem:[#allocation7 + $0x70] sm:$0xff]  ;;  %v180_v28 = vld [vmem:[#allocation7 + $0x78] sm:$0xff] }
  0x50   :  { %422 = vmatmul.mubr.msk.f32.vlgmr.msra.gmra.mrb[0].mxu0 %vm90_vm1, %v80_v10  ;;  %v516_v26 = vpack.c.bf16 %v178_v25, %v177_v24  ;;  %v519_v29 = vpack.c.bf16 %v180_v28, %v179_v27  ;;  %v259_v30 = vld [vmem:[#allocation8] sm:$0xff]  ;;  %v260_v31 = vld [vmem:[#allocation8 + $0x8] sm:$0xff]  ;;  %v261_v32 = vld [vmem:[#allocation8 + $0x10] sm:$0xff] }
  0x51   :  { %491 = vmatprep.mubr.msk.f32.mxu0 %vm684_vm0, %v685_v1  ;;  %502 = vmatpush3.bf16.msra.mxu1 %v501_v11  ;;  %v522_v33 = vpack.c.bf16 %v260_v31, %v259_v30  ;;  %v262_v34 = vld [vmem:[#allocation8 + $0x18] sm:$0xff]  ;;  %v263_v36 = vld [vmem:[#allocation8 + $0x20] sm:$0xff]  ;;  %v264_v37 = vld [vmem:[#allocation8 + $0x28] sm:$0xff]  ;;  %v352_v1 = vlaneseq }
  0x52   :  { %503 = vmatprep.subr.bf16.mxu1 %v683_v0  ;;  %v525_v35 = vpack.c.bf16 %v262_v34, %v261_v32  ;;  %v528_v38 = vpack.c.bf16 %v264_v37, %v263_v36  ;;  %v265_v39 = vld [vmem:[#allocation8 + $0x30] sm:$0xff]  ;;  %v266_v40 = vld [vmem:[#allocation8 + $0x38] sm:$0xff]  ;;  %v267_v42 = vld [vmem:[#allocation8 + $0x40] sm:$0xff] }
  0x53   :  { %523 = vmatpush3.bf16.msra.mxu0 %v522_v33  ;;  %v531_v41 = vpack.c.bf16 %v266_v40, %v265_v39  ;;  %v268_v43 = vld [vmem:[#allocation8 + $0x48] sm:$0xff]  ;;  %v269_v50 = vld [vmem:[#allocation8 + $0x50] sm:$0xff]  ;;  %v270_v51 = vld [vmem:[#allocation8 + $0x58] sm:$0xff]  ;;  %v353_v4 = vand.u32 127, %v352_v1 }
  0x54   :  { %524 = vmatprep.subr.bf16.mxu0 %v683_v0  ;;  %v534_v44 = vpack.c.bf16 %v268_v43, %v267_v42  ;;  %v376_v45 = vld [vmem:[%s827_s2] ss:$0 sm:$0xff]  ;;  %v537_v52 = vpack.c.bf16 %v270_v51, %v269_v50  ;;  %v271_v53 = vld [vmem:[#allocation8 + $0x60] sm:$0xff]  ;;  %v273_v56 = vld [vmem:[#allocation8 + $0x70] sm:$0xff] }
  0x55   :  { %505 = vmatpush3.bf16.msra.mxu1 %v504_v14  ;;  %v272_v54 = vld [vmem:[#allocation8 + $0x68] sm:$0xff]  ;;  %v274_v57 = vld [vmem:[#allocation8 + $0x78] sm:$0xff]  ;;  %vm354_vm2 = vcmp.ge.s32.totalorder %v353_v4, 64 }
  0x56   :  { %506 = vmatprep.subr.bf16.mxu1 %v683_v0  ;;  %v540_v55 = vpack.c.bf16 %v272_v54, %v271_v53  ;;  %v543_v58 = vpack.c.bf16 %v274_v57, %v273_v56  ;;  %v378_v59 = vld [vmem:[%s829_s4] ss:$0 sm:$0xff]  ;;  %s647_s4 = scalar_lea.vmem %s366_s29, 128 }
  0x57   :  { %526 = vmatpush3.bf16.msra.mxu0 %v525_v35  ;;  %v379_v2 = vld [vmem:[%s831_s6] ss:$0 sm:$0xff]  ;;  %p648_p4 = scmp.ne.s32.totalorder %s366_s29, %s647_s4  ;;  %p653_p6 = scmp.lt.s32.totalorder %s647_s4, %s647_s4 }
  0x58   :  { %527 = vmatprep.subr.bf16.mxu0 %v683_v0 }
  0x59   :  { %508 = vmatpush3.bf16.msra.mxu1 %v507_v17  ;;  %p654_p7 = por %p653_p6, %p652_p5 }
  0x5a   :  { %509 = vmatprep.subr.bf16.mxu1 %v683_v0 }
  0x5b   :  { %529 = vmatpush3.bf16.msra.mxu0 %v528_v38  ;;  %p655_p8 = pnand %p654_p7, %p648_p4 }
  0x5c   :  { %530 = vmatprep.subr.bf16.mxu0 %v683_v0 }
  0x5d   :  { %511 = vmatpush3.bf16.msra.mxu1 %v510_v20 }
  0x5e   :  { %512 = vmatprep.subr.bf16.mxu1 %v683_v0 }
  0x5f   :  { %532 = vmatpush3.bf16.msra.mxu0 %v531_v41 }
  0x60   :  { %533 = vmatprep.subr.bf16.mxu0 %v683_v0 }
  0x61   :  { %514 = vmatpush3.bf16.msra.mxu1 %v513_v23 }
  0x62   :  { %515 = vmatprep.subr.bf16.mxu1 %v683_v0 }
  0x63   :  { %535 = vmatpush3.bf16.msra.mxu0 %v534_v44 }
  0x64   :  { %536 = vmatprep.subr.bf16.mxu0 %v683_v0 }
  0x65   :  { %517 = vmatpush3.bf16.msra.mxu1 %v516_v26 }
  0x66   :  { %518 = vmatprep.subr.bf16.mxu1 %v683_v0 }
  0x67   :  { %538 = vmatpush3.bf16.msra.mxu0 %v537_v52 }
  0x68   :  { %539 = vmatprep.subr.bf16.mxu0 %v683_v0 }
  0x69   :  { %520 = vmatpush3.bf16.msra.mxu1 %v519_v29 }
  0x6b   :  { %541 = vmatpush3.bf16.msra.mxu0 %v540_v55 }
  0x6c   :  { %542 = vmatprep.subr.bf16.mxu0 %v683_v0 }
  0x6f   :  { %544 = vmatpush3.bf16.msra.mxu0 %v543_v58 }
 0x123   :  { %v160_v46 = vpop.f32.mrb[0].mxu0 }
 0x124   :  { %v161_v47 = vadd.f32 %v376_v45, %v160_v46  ;;  %v423_v48 = vpop.f32.mrb[1].mxu0 }
 0x126   :  { %555 = vtanh.f32 %v161_v47 }
 0x130   :  { %v556_v49 = vpop.eup %555 }
 0x131   :  { %457 = vmatmul.mubr.f32.vlgmr.msra.gmra.mrb[0].mxu1 %v556_v49 }
 0x204   :  { %v254_v60 = vpop.f32.mrb[0].mxu1 }
 0x205   :  { %v255_v61 = vadd.f32 %v378_v59, %v254_v60  ;;  %v458_v62 = vpop.f32.mrb[1].mxu1 }
 0x207   :  { %557 = vtanh.f32 %v255_v61 }
 0x211   :  { %v558_v63 = vpop.eup %557 }
 0x212   :  { %492 = vmatmul.mubr.f32.vlgmr.msra.gmra.mrb[2].mxu0 %v558_v63 }
 0x2e5   :  { %v348_v3 = vpop.f32.mrb[2].mxu0 }
 0x2e6   :  { %v349_v5 = vadd.f32 %v379_v2, %v348_v3  ;;  %v493_v0 = vpop.f32.mrb[3].mxu0 }
 0x2e8   :  { %v355_v6 = vmax.f32 %v349_v5, -20.0 }
 0x2ea   :  { %v356_v7 = vmin.f32 %v355_v6, 2.0 }
 0x2ec   :  { %v357_v8 = vsel %vm354_vm2, %v356_v7, %v349_v5 }
 0x2ed   :  { %358 = vst [vmem:[#allocation10] sm:$0xff] %v357_v8 }
 0x2ee   :  { %658 = shalt.err (!%p655_p8)
}
 0x2ef   :  { %s659_s8 = scalar_lea.hbm %s832_s7, 128 }
 0x2f0   :  { %p660_p9 = scmp.ne.s32.totalorder %s832_s7, %s659_s8  ;;  %p663_p10 = scmp.lt.u32.totalorder %s659_s8, %s832_s7 }
 0x2f2   :  { %p665_p11 = pnand %p663_p10, %p660_p9 }
 0x2f4   :  { %668 = shalt.err (!%p665_p11)
}
 0x2f5   :  { %368 = dma.vmem_to_hbm [thread:$0]  %s366_s29, 128, %s832_s7, [#allocation4]  }
 0x2f6   :  { %675 = dma.done.wait [#allocation4], 128  }
 0x2f7   :  { %676 = vsyncadd [#allocation4], 4294967168 }
 0x2f8   :  { %372 = vsyncpa [#allocation3], 1 }
 0x2f9   :  { %373 = vsyncpa [#allocation6], 1 }
 0x2fa   :  { %374 = vsyncpa [#allocation9], 1 }
 0x2fb   :  { %375 = vsyncpa [#allocation4], 1 }

</bundles_post_ra>
